<compile_context>
chip_gen: v5e
topology: v5e:2x2
jax: 0.10.0
libtpu: 0.0.40
codegen_flags: <defaults>
</compile_context>

<pallas_src>
import math

import jax
import jax.numpy as jnp
from jax.experimental import pallas as pl
from jax.experimental.pallas import tpu as pltpu


def _add_pe_kernel(x_ref, scale_ref, phase_ref, o_ref):
    """One (ts, tc) tile of x reshaped to (S, B*D).

    scale_ref/phase_ref: (1, tc) hoisted per-lane rows:
      scale[c] = div_term[feat(c) // 2],  phase[c] = (feat(c) % 2) * pi/2
    pe[r, c] = sin(pos(r) * scale[c] + phase[c])   (sin(a + pi/2) == cos(a))
    """
    ts = x_ref.shape[0]
    row0 = pl.program_id(0) * ts
    # Sequence position is purely a row (sublane) quantity: a (ts, 1) column.
    pos = (jax.lax.broadcasted_iota(jnp.int32, (ts, 1), 0) + row0).astype(jnp.float32)
    angle = pos * scale_ref[...] + phase_ref[...]          # (ts,1)*(1,tc)+(1,tc)
    # pe is computed in f32 (matching the PyTorch f32 buffer); the final cast
    # to x.dtype is the only divergence for low-precision inputs.
    o_ref[...] = (x_ref[...].astype(jnp.float32) + jnp.sin(angle)).astype(o_ref.dtype)


def positional_encoding_forward(x: jnp.ndarray, max_len: int = 512) -> jnp.ndarray:
    """x: (S, B, D); returns x + pe[:S], same math as the PyTorch module."""
    S, B, D = x.shape
    assert S <= max_len, "sequence length exceeds max_len"
    C = B * D
    x2 = x.reshape(S, C)                                   # lane axis = B*D

    # Hoisted per-lane constants (computed once, in plain JAX, f32).
    div_term = jnp.exp(
        jnp.arange(0, D, 2, dtype=jnp.float32) * (-math.log(10000.0) / D)
    )                                                       # (ceil(D/2),)
    feat = jnp.arange(D)
    scale_d = div_term[feat // 2]                           # (D,)
    phase_d = jnp.where(feat % 2 == 1,
                        jnp.float32(math.pi / 2), jnp.float32(0.0))
    scale = jnp.tile(scale_d, B).reshape(1, C)              # (1, B*D)
    phase = jnp.tile(phase_d, B).reshape(1, C)

    itemsize = jnp.dtype(x.dtype).itemsize
    tile_budget = 2 * 1024 * 1024          # bytes per x tile (~8 MiB resident w/ dbl-buf)

    # --- row (sublane) tiling: multiple of 8, or the full dim when S <= 8 ---
    if S <= 8:
        ts = S
    else:
        rows_fit = max(8, (tile_budget // max(C * itemsize, 1)) // 8 * 8)
        half_rows = (((S + 1) // 2 + 7) // 8) * 8  # force >= 2 steps (v7x megacore)
        ts = max(8, min(rows_fit, half_rows))

    # --- lane tiling only if even an 8-row slab would blow the VMEM budget ---
    if ts * C * itemsize > 2 * tile_budget and C % 128 == 0:
        tc = max(128, (tile_budget // max(ts * itemsize, 1)) // 128 * 128)
        tc = min(tc, C)
    else:
        tc = C                                              # full lane extent: always legal

    grid = (pl.cdiv(S, ts), pl.cdiv(C, tc))

    out2 = pl.pallas_call(
        _add_pe_kernel,
        out_shape=jax.ShapeDtypeStruct((S, C), x.dtype),
        grid_spec=pl.GridSpec(
            grid=grid,
            in_specs=[
                pl.BlockSpec((ts, tc), lambda i, j: (i, j)),     # x tile
                pl.BlockSpec((1, tc), lambda i, j: (0, j)),      # scale row (fetched once)
                pl.BlockSpec((1, tc), lambda i, j: (0, j)),      # phase row (fetched once)
            ],
            out_specs=pl.BlockSpec((ts, tc), lambda i, j: (i, j)),
        ),
        compiler_params=pltpu.CompilerParams(
            dimension_semantics=("parallel", "parallel"),
            vmem_limit_bytes=32 * 1024 * 1024,
        ),
    )(x2, scale, phase)
    return out2.reshape(S, B, D)


def make_positional_encoding(d_model: int, max_len: int = 512) -> jnp.ndarray:
    """Plain-JAX buffer construction (mirrors the PyTorch __init__) for checking."""
    position = jnp.arange(max_len, dtype=jnp.float32)[:, None]           # (max_len, 1)
    div_term = jnp.exp(
        jnp.arange(0, d_model, 2, dtype=jnp.float32)
        * (-math.log(10000.0) / d_model)
    )                                                                    # (d_model/2,)
    angles = position * div_term                                         # (max_len, d/2)
    pe = jnp.zeros((max_len, 1, d_model), dtype=jnp.float32)
    pe = pe.at[:, 0, 0::2].set(jnp.sin(angles))
    pe = pe.at[:, 0, 1::2].set(jnp.cos(angles))
    return pe


if __name__ == "__main__":
    # Small shapes: seq=8, batch=2, d_model=32, max_len=512.
    S, B, D = 8, 2, 32
    key = jax.random.PRNGKey(0)
    x = jax.random.normal(key, (S, B, D), dtype=jnp.float32)

    # Reference in plain JAX (same math as the PyTorch forward).
    pe = make_positional_encoding(d_model=D, max_len=512)
    ref = x + pe[:S]

    out = jax.block_until_ready(positional_encoding_forward(x))

    assert out.shape == (S, B, D)
    assert jnp.allclose(out, ref, atol=1e-4, rtol=1e-5), "mismatch vs reference"

    print("KERNEL_OK")
</pallas_src>

<mosaic_0001>
module attributes {stable_mosaic.version = 11 : i64} {
  func.func @_add_pe_kernel(%arg0: i32, %arg1: i32, %arg2: memref<8x64xf32, #tpu.memory_space<vmem>>, %arg3: memref<1x64xf32, #tpu.memory_space<vmem>>, %arg4: memref<1x64xf32, #tpu.memory_space<vmem>>, %arg5: memref<8x64xf32, #tpu.memory_space<vmem>>) attributes {dimension_semantics = [#tpu.dimension_semantics<parallel>, #tpu.dimension_semantics<parallel>], iteration_bounds = array<i64: 1, 1>, scalar_prefetch = 0 : i64, scratch_operands = 0 : i64, tpu.core_type = #tpu.core_type<tc>, window_params = [{transform_indices = @transform_0, window_bounds = array<i64: 8, 64>}, {transform_indices = @transform_1, window_bounds = array<i64: 1, 64>}, {transform_indices = @transform_2, window_bounds = array<i64: 1, 64>}, {transform_indices = @transform_3, window_bounds = array<i64: 8, 64>}]} {
    %c8_i32 = arith.constant 8 : i32
    %0 = arith.muli %arg0, %c8_i32 : i32
    %1 = tpu.iota {dimensions = array<i32: 0>} : vector<8x1xi32>
    %2 = vector.broadcast %0 : i32 to vector<8x1xi32>
    %3 = arith.addi %1, %2 : vector<8x1xi32>
    %4 = arith.sitofp %3 : vector<8x1xi32> to vector<8x1xf32>
    %c0 = arith.constant 0 : index
    %c0_0 = arith.constant 0 : index
    %5 = vector.load %arg3[%c0, %c0_0] : memref<1x64xf32, #tpu.memory_space<vmem>>, vector<1x64xf32>
    %6 = vector.broadcast %4 : vector<8x1xf32> to vector<8x64xf32>
    %7 = vector.broadcast %5 : vector<1x64xf32> to vector<8x64xf32>
    %8 = arith.mulf %6, %7 : vector<8x64xf32>
    %c0_1 = arith.constant 0 : index
    %c0_2 = arith.constant 0 : index
    %9 = vector.load %arg4[%c0_1, %c0_2] : memref<1x64xf32, #tpu.memory_space<vmem>>, vector<1x64xf32>
    %10 = vector.broadcast %9 : vector<1x64xf32> to vector<8x64xf32>
    %11 = arith.addf %8, %10 : vector<8x64xf32>
    %c0_3 = arith.constant 0 : index
    %c0_4 = arith.constant 0 : index
    %12 = vector.load %arg2[%c0_3, %c0_4] : memref<8x64xf32, #tpu.memory_space<vmem>>, vector<8x64xf32>
    %13 = math.sin %11 : vector<8x64xf32>
    %14 = arith.addf %12, %13 : vector<8x64xf32>
    %c0_5 = arith.constant 0 : index
    %c0_6 = arith.constant 0 : index
    %15 = vector.load %arg5[%c0_5, %c0_6] : memref<8x64xf32, #tpu.memory_space<vmem>>, vector<8x64xf32>
    tpu.vector_store %arg5[%c0_5, %c0_6], %14 {strides = array<i32>} : memref<8x64xf32, #tpu.memory_space<vmem>>, vector<8x64xf32>,
    return
  }
  func.func @transform_0(%arg0: i32, %arg1: i32) -> (i32, i32) {
    %c0_i32 = arith.constant 0 : i32
    return %arg0, %arg1 : i32, i32
  }
  func.func @transform_1(%arg0: i32, %arg1: i32) -> (i32, i32) {
    %c0_i32 = arith.constant 0 : i32
    %c0_i32_0 = arith.constant 0 : i32
    return %c0_i32, %arg1 : i32, i32
  }
  func.func @transform_2(%arg0: i32, %arg1: i32) -> (i32, i32) {
    %c0_i32 = arith.constant 0 : i32
    %c0_i32_0 = arith.constant 0 : i32
    return %c0_i32, %arg1 : i32, i32
  }
  func.func @transform_3(%arg0: i32, %arg1: i32) -> (i32, i32) {
    %c0_i32 = arith.constant 0 : i32
    return %arg0, %arg1 : i32, i32
  }
}

</mosaic_0001>

<bundles_post_ra>
// kernel: tpu_custom_call.1
= control target key start
LH: loop header
LB: loop body
LE: loop exit
PB: predicated region body
PF: predicated region fallthrough
CT: control target
= control target key end

     0   :  { %8 = vsyncpa [#allocation3], 0  ;;  %s417_s0 = inlined_call_operand.hbm [shape: f32[8,64], index: 0, kind: input, shape index: {}]   ;;  %s418_s1 = inlined_call_operand.hbm [shape: f32[1,64], index: 1, kind: input, shape index: {}]   ;;  %s419_s2 = inlined_call_operand.vmem [shape: f32[1,64], index: 2, kind: input, shape index: {}]   ;;  %s420_s3 = inlined_call_operand.hbm [shape: f32[8,64], index: 3, kind: output, shape index: {}]  }
   0x1   :  { %9 = vsyncpa [#allocation6], 0 }
   0x2   :  { %10 = vsyncpa [#allocation4], 0  ;;  %s16_s14 = sshll.u32 %s417_s0, 4  ;;  %s329_s15 = smov [#allocation2]   ;;  %s17_s14 = int_to_ptr.hbm [resolvable:$true] %s16_s14 }
   0x3   :  { %s18_s16 = sshll.u32 %s329_s15, 4  ;;  %s27_s19 = sshll.u32 %s418_s1, 4  ;;  %s19_s16 = int_to_ptr.vmem [resolvable:$true] %s18_s16  ;;  %s28_s19 = int_to_ptr.hbm [resolvable:$true] %s27_s19 }
   0x4   :  { %21 = dma.hbm_to_vmem [thread:$0]  %s17_s14, 128, %s19_s16, [#allocation3]  }
   0x5   :  { %s330_s20 = smov [#allocation5]  }
   0x6   :  { %s29_s21 = sshll.u32 %s330_s20, 4  ;;  %s30_s21 = int_to_ptr.vmem [resolvable:$true] %s29_s21 }
   0x7   :  { %32 = dma.hbm_to_vmem [thread:$0]  %s28_s19, 16, %s30_s21, [#allocation6]  }
   0x8   :  { %323 = dma.done.wait [#allocation3], 128  }
   0x9   :  { %324 = vsyncadd [#allocation3], 4294967168 }
   0xa   :  { %325 = dma.done.wait [#allocation6], 16  }
   0xb   :  { %326 = vsyncadd [#allocation6], 4294967280  ;;  %v44_v0 = vlaneseq  ;;  %v249_v3 = vld [vmem:[#allocation5] ss:$0 sm:$0xff]  ;;  %v250_v4 = vld [vmem:[%s419_s2] ss:$0 sm:$0xff] }
   0xc   :  { %v331_v18 = vmov 683565275   ;;  %v332_v20 = vmov 2475754826   ;;  %v333_v22 = vmov 2131351028  }
   0xd   :  { %v45_v1 = vshrl.u32 %v44_v0, 7  ;;  %v334_v24 = vmov 2102212464   ;;  %v335_v26 = vmov 920167782   ;;  %s338_s1 = smov [#allocation7]  }
   0xe   :  { %v336_v32 = vmov 1326507024   ;;  %s223_s2 = sshll.u32 %s338_s1, 4  ;;  %s225_s25 = sshll.u32 %s420_s3, 4  ;;  %s224_s2 = int_to_ptr.vmem [resolvable:$true] %s223_s2  ;;  %s226_s25 = int_to_ptr.hbm [resolvable:$true] %s225_s25 }
   0xf   :  { %v48_v2 = vcvt.s32.f32 %v45_v1 }
  0x11   :  { %v53_v5 = vmul.f32 %v249_v3, %v48_v2 }
  0x13   :  { %v368_v6 = vadd.f32 %v250_v4, %v53_v5 }
  0x15   :  { %v63_v7 = vand.u32 2139095040, %v368_v6  ;;  %v60_v9 = vand.u32 2147483647, %v368_v6  ;;  %vm62_vm12 = vcmp.lt.s32.totalorder %v368_v6, 0 }
  0x17   :  { %v64_v8 = vshrl.u32 %v63_v7, 23  ;;  %v67_v12 = vand.u32 8388607, %v60_v9  ;;  %v337_v7 = vmov 0   ;;  %vm61_vm13 = vcmp.le.f32.partialorder %v60_v9, 0.7853982 }
  0x19   :  { %v236_v10 = vadd.s32 4294967169, %v64_v8  ;;  %v68_v15 = vor.u32 8388608, %v67_v12 }
  0x1b   :  { %v70_v11 = vadd.s32 1, %v236_v10  ;;  %v377_v34 = vshll.u32 %v68_v15, 8 }
  0x1d   :  { %vm71_vm0 = vcmp.gt.s32.totalorder %v70_v11, 0  ;;  %v109_v46 = vand.u32 65535, %v377_v34  ;;  %v110_v47 = vshrl.u32 %v377_v34, 16 }
  0x1e   :  { %v72_v13 = vsel %vm71_vm0, %v70_v11, 0 }
  0x1f   :  { %v74_v14 = vand.u32 31, %v72_v13  ;;  %v374_v16 = vshrl.u32 %v72_v13, 5 }
  0x21   :  { %v75_v17 = vsub.s32 32, %v74_v14  ;;  %v77_v19 = vshll.u32 %v331_v18, %v74_v14  ;;  %v80_v21 = vshll.u32 %v332_v20, %v74_v14  ;;  %v83_v23 = vshll.u32 %v333_v22, %v74_v14 }
  0x22   :  { %v86_v25 = vshll.u32 %v334_v24, %v74_v14  ;;  %v89_v27 = vshll.u32 %v335_v26, %v74_v14  ;;  %vm92_vm1 = vcmp.lt.s32.totalorder %v374_v16, 1  ;;  %vm95_vm2 = vcmp.lt.s32.totalorder %v374_v16, 4 }
  0x23   :  { %v78_v28 = vshrl.u32 %v332_v20, %v75_v17  ;;  %v81_v29 = vshrl.u32 %v333_v22, %v75_v17  ;;  %v84_v30 = vshrl.u32 %v334_v24, %v75_v17  ;;  %v87_v31 = vshrl.u32 %v335_v26, %v75_v17 }
  0x24   :  { %v90_v33 = vshrl.u32 %v336_v32, %v75_v17  ;;  %vm94_vm3 = vcmp.lt.s32.totalorder %v374_v16, 3  ;;  %vm93_vm4 = vcmp.lt.s32.totalorder %v374_v16, 2  ;;  %v76_v54 = vshrl.u32 %v331_v18, %v75_v17 }
  0x25   :  { %v79_v35 = vor.u32 %v78_v28, %v77_v19  ;;  %v82_v36 = vor.u32 %v81_v29, %v80_v21  ;;  %v85_v37 = vor.u32 %v84_v30, %v83_v23  ;;  %v88_v38 = vor.u32 %v87_v31, %v86_v25 }
  0x26   :  { %v91_v39 = vor.u32 %v90_v33, %v89_v27 }
  0x27   :  { %v100_v40 = vsel %vm92_vm1, %v79_v35, %v82_v36  ;;  %v104_v41 = vsel %vm92_vm1, %v82_v36, %v85_v37  ;;  %v101_v42 = vsel %vm95_vm2, %v88_v38, 920167782  ;;  %v96_v3 = vsel %vm92_vm1, %v76_v54, %v79_v35 }
  0x28   :  { %v105_v43 = vsel %vm95_vm2, %v91_v39, 1326507024  ;;  %v102_v44 = vsel %vm94_vm3, %v85_v37, %v101_v42  ;;  %v97_v5 = vsel %vm95_vm2, %v85_v37, 2102212464  ;;  %vm203_vm1 = vweird.f32 %v368_v6 }
  0x29   :  { %v106_v45 = vsel %vm94_vm3, %v88_v38, %v105_v43  ;;  %v103_v48 = vsel %vm93_vm4, %v100_v40, %v102_v44  ;;  %v98_v18 = vsel %vm94_vm3, %v82_v36, %v97_v5  ;;  %vm216_vm2 = vcmask 523264  }
  0x2a   :  { %v107_v49 = vsel %vm93_vm4, %v104_v41, %v106_v45  ;;  %v133_v52 = vand.u32 65535, %v103_v48  ;;  %v134_v53 = vshrl.u32 %v103_v48, 16  ;;  %v99_v26 = vsel %vm93_vm4, %v96_v3, %v98_v18 }
  0x2b   :  { %v111_v50 = vand.u32 65535, %v107_v49  ;;  %v112_v51 = vshrl.u32 %v107_v49, 16  ;;  %v153_v30 = vmul.u32 %v377_v34, %v99_v26 }
  0x2c   :  { %v135_v58 = vmul.u32 %v133_v52, %v109_v46  ;;  %v136_v59 = vmul.u32 %v134_v53, %v109_v46  ;;  %v137_v60 = vmul.u32 %v133_v52, %v110_v47  ;;  %v138_v0 = vmul.u32 %v134_v53, %v110_v47 }
  0x2d   :  { %v113_v55 = vmul.u32 %v111_v50, %v109_v46  ;;  %v114_v56 = vmul.u32 %v112_v51, %v109_v46  ;;  %v115_v57 = vmul.u32 %v111_v50, %v110_v47  ;;  %v116_v61 = vmul.u32 %v112_v51, %v110_v47 }
  0x2e   :  { %v139_v1 = vshll.u32 %v136_v59, 16  ;;  %v141_v2 = vshll.u32 %v137_v60, 16  ;;  %v140_v15 = vshrl.u32 %v136_v59, 16  ;;  %v142_v22 = vshrl.u32 %v137_v60, 16 }
  0x2f   :  { %v117_v62 = vshll.u32 %v114_v56, 16  ;;  %v119_v63 = vshll.u32 %v115_v57, 16  ;;  %v118_v11 = vshrl.u32 %v114_v56, 16  ;;  %v120_v19 = vshrl.u32 %v115_v57, 16 }
  0x30   :  { %vm143_vm6 = vc.u32 %v135_v58, %v139_v1  ;;  %v145_v10 = vadd.s32 %v139_v1, %v135_v58 }
  0x31   :  { %vm121_vm5 = vc.u32 %v113_v55, %v117_v62  ;;  %v123_v4 = vadd.s32 %v117_v62, %v113_v55  ;;  %v144_v13 = vsel %vm143_vm6, 1, %v337_v7 }
  0x32   :  { %v122_v8 = vsel %vm121_vm5, 1, %v337_v7  ;;  %v146_v17 = vadd.s32 %v144_v13, %v138_v0  ;;  %vm147_vm8 = vc.u32 %v145_v10, %v141_v2  ;;  %v149_v25 = vadd.s32 %v145_v10, %v141_v2 }
  0x33   :  { %v124_v12 = vadd.s32 %v122_v8, %v116_v61  ;;  %vm125_vm7 = vc.u32 %v123_v4, %v119_v63  ;;  %v148_v21 = vsel %vm147_vm8, 1, %v337_v7 }
  0x34   :  { %v126_v14 = vsel %vm125_vm7, 1, %v337_v7  ;;  %v150_v23 = vadd.s32 %v148_v21, %v146_v17  ;;  %v59_v17 = vld [vmem:[#allocation2] sm:$0xff] }
  0x35   :  { %v128_v20 = vadd.s32 %v126_v14, %v124_v12 }
  0x36   :  { %v151_v27 = vadd.s32 %v150_v23, %v140_v15 }
  0x37   :  { %v129_v24 = vadd.s32 %v128_v20, %v118_v11 }
  0x38   :  { %v152_v29 = vadd.s32 %v151_v27, %v142_v22 }
  0x39   :  { %v130_v28 = vadd.s32 %v129_v24, %v120_v19 }
  0x3a   :  { %v156_v31 = vadd.s32 1, %v152_v29 }
  0x3b   :  { %vm155_vm9 = vc.u32 %v130_v28, %v149_v25  ;;  %v154_v16 = vadd.s32 %v149_v25, %v130_v28 }
  0x3c   :  { %v157_v32 = vsel %vm155_vm9, %v156_v31, %v152_v29 }
  0x3d   :  { %v158_v33 = vadd.s32 %v157_v32, %v153_v30 }
  0x3f   :  { %v159_v35 = vadd.s32 536870912, %v158_v33 }
  0x41   :  { %v160_v36 = vshrl.u32 %v159_v35, 30 }
  0x43   :  { %v161_v37 = vshll.u32 %v160_v36, 30  ;;  %v184_v54 = vsub.s32 4, %v160_v36 }
  0x45   :  { %v162_v38 = vsub.s32 %v158_v33, %v161_v37  ;;  %v185_v57 = vsel %vm62_vm12, %v184_v54, %v160_v36 }
  0x46   :  { %v187_v60 = vsel %vm61_vm13, 0, %v185_v57 }
  0x47   :  { %vm163_vm10 = vcmp.lt.s32.totalorder %v162_v38, 0  ;;  %v164_v39 = vsub.s32 0, %v162_v38  ;;  %v204_v1 = vadd.s32 3, %v187_v60 }
  0x49   :  { %v165_v40 = vsel %vm163_vm10, %v164_v39, %v162_v38  ;;  %v205_v7 = vand.u32 3, %v204_v1 }
  0x4a   :  { %v166_v41 = vclz %v165_v40 }
  0x4b   :  { %vm210_vm14 = vcmp.eq.s32.totalorder %v205_v7, 2  ;;  %vm207_vm15 = vcmp.eq.s32.totalorder %v205_v7, 0  ;;  %vm206_vm0 = vcmp.lt.s32.totalorder %v205_v7, 2 }
  0x4c   :  { %v237_v42 = vadd.s32 4294967294, %v166_v41 }
  0x4e   :  { %vm238_vm11 = vcmp.lt.s32.totalorder %v237_v42, 0 }
  0x4f   :  { %v169_v43 = vsel %vm238_vm11, 0, %v237_v42 }
  0x50   :  { %v170_v44 = vsub.s32 32, %v169_v43  ;;  %v171_v45 = vshll.u32 %v162_v38, %v169_v43  ;;  %v174_v46 = vsub.s32 4294967266, %v169_v43 }
  0x52   :  { %v172_v34 = vshrl.u32 %v154_v16, %v170_v44  ;;  %v175_v47 = vadd.s32 127, %v174_v46 }
  0x54   :  { %v173_v48 = vor.u32 %v172_v34, %v171_v45  ;;  %v176_v49 = vshll.u32 %v175_v47, 23 }
  0x56   :  { %v177_v50 = vor.u32 4788187, %v176_v49  ;;  %v180_v51 = vcvt.s32.f32 %v173_v48 }
  0x58   :  { %v178_v52 = vand.u32 2147483647, %v177_v50 }
  0x5a   :  { %v181_v53 = vmul.f32 %v180_v51, %v178_v52 }
  0x5c   :  { %v182_v55 = vxor.u32 2147483648, %v181_v53 }
  0x5e   :  { %v183_v56 = vsel %vm62_vm12, %v182_v55, %v181_v53 }
  0x5f   :  { %v186_v58 = vsel %vm61_vm13, %v368_v6, %v183_v56 }
  0x60   :  { %v188_v59 = vmul.f32 %v186_v58, %v186_v58 }
  0x62   :  { %v189_v61 = vmul.f32 -0.001358992, %v188_v59  ;;  %v196_v62 = vmul.f32 -0.00019511016, %v188_v59 }
  0x64   :  { %v190_v63 = vadd.f32 0.041655596, %v189_v61  ;;  %v197_v0 = vadd.f32 0.008332121, %v196_v62 }
  0x66   :  { %v191_v2 = vmul.f32 %v190_v63, %v188_v59  ;;  %v198_v3 = vmul.f32 %v197_v0, %v188_v59 }
  0x68   :  { %v192_v4 = vadd.f32 -0.4999988, %v191_v2  ;;  %v199_v5 = vadd.f32 -0.16666654, %v198_v3 }
  0x6a   :  { %v193_v8 = vmul.f32 %v192_v4, %v188_v59  ;;  %v200_v10 = vmul.f32 %v199_v5, %v188_v59 }
  0x6c   :  { %v194_v9 = vadd.f32 1.0, %v193_v8  ;;  %v201_v11 = vadd.f32 1.0, %v200_v10 }
  0x6e   :  { %v202_v12 = vmul.f32 %v201_v11, %v186_v58  ;;  %v211_v13 = vxor.u32 2147483648, %v194_v9 }
  0x70   :  { %v208_v14 = vxor.u32 2147483648, %v202_v12  ;;  %v212_v15 = vsel %vm210_vm14, %v211_v13, %v202_v12 }
  0x72   :  { %v209_v18 = vsel %vm207_vm15, %v194_v9, %v208_v14 }
  0x73   :  { %v213_v19 = vsel %vm206_vm0, %v209_v18, %v212_v15 }
  0x74   :  { %v214_v20 = vsel %vm203_vm1, nan, %v213_v19 }
  0x75   :  { %v215_v21 = vadd.f32 %v214_v20, %v59_v17 }
  0x77   :  { %217 = vst.msk [vmem:[#allocation7] sm:$0xff] %vm216_vm2, %v215_v21 }
  0x78   :  { %228 = dma.vmem_to_hbm [thread:$0]  %s224_s2, 128, %s226_s25, [#allocation4]  }
  0x79   :  { %327 = dma.done.wait [#allocation4], 128  }
  0x7a   :  { %328 = vsyncadd [#allocation4], 4294967168 }
  0x7b   :  { %233 = vsyncpa [#allocation3], 1 }
  0x7c   :  { %234 = vsyncpa [#allocation6], 1 }
  0x7d   :  { %235 = vsyncpa [#allocation4], 1 }

</bundles_post_ra>
